<compile_context>
chip_gen: v7x
topology: tpu7x:2x2x1
jax: 0.10.0
libtpu: 0.0.40
codegen_flags: <defaults>
</compile_context>

<pallas_src>
import functools

import jax
import jax.numpy as jnp
from jax.experimental import pallas as pl
from jax.experimental.pallas import tpu as pltpu

_LANE = 128
_VMEM_LIMIT = 32 * 1024 * 1024  # safe scoped-VMEM request on v5e/v6e/v7x


def _round_up(x, m):
    return ((x + m - 1) // m) * m


def _choose_tile(n, target):
    """Largest multiple of 128 <= target that divides n (n is a multiple of 128)."""
    t = min(target, n)
    while n % t:
        t -= _LANE
    return t


def _pad2(x, rows, cols):
    return jnp.pad(x, ((0, rows - x.shape[0]), (0, cols - x.shape[1])))


# --------------------------------------------------------------------------
# Kernel 1: per-relation feature transform  HW[r] = H @ W_r  (hoisted once).
# --------------------------------------------------------------------------
def _transform_kernel(h_ref, w_ref, hw_ref):
    # bf16 operands, f32 MXU accumulation, bf16 store (feeds the next kernel).
    hw_ref[...] = jnp.dot(
        h_ref[...], w_ref[...], preferred_element_type=jnp.float32
    ).astype(hw_ref.dtype)


def _transform(h_bf16, w_rel_bf16, *, tm):
    n, fin = h_bf16.shape
    num_rels, _, fout = w_rel_bf16.shape
    return pl.pallas_call(
        _transform_kernel,
        out_shape=jax.ShapeDtypeStruct((num_rels, n, fout), jnp.bfloat16),
        grid_spec=pltpu.PrefetchScalarGridSpec(
            num_scalar_prefetch=0,
            grid=(n // tm, num_rels),
            in_specs=[
                pl.BlockSpec((tm, fin), lambda i, r: (i, 0)),
                pl.BlockSpec((None, fin, fout), lambda i, r: (r, 0, 0)),
            ],
            out_specs=pl.BlockSpec((None, tm, fout), lambda i, r: (r, i, 0)),
        ),
        compiler_params=pltpu.CompilerParams(
            dimension_semantics=("parallel", "arbitrary"),
            vmem_limit_bytes=_VMEM_LIMIT),
    )(h_bf16, w_rel_bf16)


# --------------------------------------------------------------------------
# Kernel 2: tiled aggregation  out[i] = H[i] @ W_self + b + sum_{r,k} A[r,i,k] @ HW[r,k]
# Grid = (dst_tiles, relations, src_tiles); output tile is a VMEM-resident
# accumulator across the last two (reduction) axes.
# --------------------------------------------------------------------------
def _aggregate_kernel(a_ref, hw_ref, h_ref, wself_ref, b_ref, o_ref,
                      *, apply_relu):
    r = pl.program_id(1)
    k = pl.program_id(2)

    # Init accumulator with self-loop term + bias (f32 epilogue math).
    @pl.when((r == 0) & (k == 0))
    def _():
        o_ref[...] = (
            jnp.dot(h_ref[...], wself_ref[...],
                    preferred_element_type=jnp.float32)
            + b_ref[...]
        )

    # Message + sum-aggregation for this (relation, src-tile): A_tile @ HW_r.
    o_ref[...] += jnp.dot(a_ref[...], hw_ref[...],
                          preferred_element_type=jnp.float32)

    if apply_relu:  # fused ReLU between conv1 and conv2, f32.
        @pl.when((r == pl.num_programs(1) - 1) & (k == pl.num_programs(2) - 1))
        def _():
            o_ref[...] = jnp.maximum(o_ref[...], 0.0)


def _aggregate(adj_bf16, hw_bf16, h_bf16, w_self_bf16, bias_f32,
               *, tm, tk, apply_relu):
    num_rels, n, _ = adj_bf16.shape
    fin = h_bf16.shape[1]
    fout = w_self_bf16.shape[1]
    kernel = functools.partial(_aggregate_kernel, apply_relu=apply_relu)
    # TODO(synk): real graphs are highly sparse — a scalar-prefetch block mask
    # (PrefetchScalarGridSpec num_scalar_prefetch>0) could skip all-zero
    # adjacency tiles; dense streaming is kept here for simplicity.
    return pl.pallas_call(
        kernel,
        out_shape=jax.ShapeDtypeStruct((n, fout), jnp.float32),
        grid_spec=pltpu.PrefetchScalarGridSpec(
            num_scalar_prefetch=0,
            grid=(n // tm, num_rels, n // tk),
            in_specs=[
                pl.BlockSpec((None, tm, tk), lambda i, r, k: (r, i, k)),
                pl.BlockSpec((None, tk, fout), lambda i, r, k: (r, k, 0)),
                pl.BlockSpec((tm, fin), lambda i, r, k: (i, 0)),
                pl.BlockSpec((fin, fout), lambda i, r, k: (0, 0)),
                pl.BlockSpec((1, fout), lambda i, r, k: (0, 0)),
            ],
            out_specs=pl.BlockSpec((tm, fout), lambda i, r, k: (i, 0)),
        ),
        compiler_params=pltpu.CompilerParams(
            dimension_semantics=("parallel", "arbitrary", "arbitrary"),
            vmem_limit_bytes=_VMEM_LIMIT),
    )(adj_bf16, hw_bf16, h_bf16, w_self_bf16, bias_f32)


# --------------------------------------------------------------------------
# Encoder forward: two RelGraphConv layers with ReLU in between.
# --------------------------------------------------------------------------
def encoder_forward(params, adj, feat):
    num_rels, n_nodes, _ = adj.shape
    in_feats = feat.shape[1]
    h_feats = params["w1_self"].shape[1]
    out_feats = params["w2_self"].shape[1]

    # Pad nodes and all feature dims to multiples of 128 (lane-dense tiles).
    n_p = _round_up(max(n_nodes, 8), _LANE)
    fin_p = _round_up(in_feats, _LANE)
    hid_p = _round_up(h_feats, _LANE)
    fout_p = _round_up(out_feats, _LANE)
    tm = _choose_tile(n_p, 256)   # dst-row tile
    tk = _choose_tile(n_p, 512)   # src-col tile

    # bf16 streamed operands (adjacency entries are small integer edge counts,
    # exactly representable in bf16 up to 256).
    adj_b = jnp.pad(adj, ((0, 0), (0, n_p - n_nodes),
                          (0, n_p - n_nodes))).astype(jnp.bfloat16)
    feat_b = _pad2(feat, n_p, fin_p).astype(jnp.bfloat16)

    w1r = jnp.pad(params["w1_rel"],
                  ((0, 0), (0, fin_p - in_feats),
                   (0, hid_p - h_feats))).astype(jnp.bfloat16)
    w1s = _pad2(params["w1_self"], fin_p, hid_p).astype(jnp.bfloat16)
    b1 = _pad2(params["b1"], 1, hid_p).astype(jnp.float32)

    w2r = jnp.pad(params["w2_rel"],
                  ((0, 0), (0, hid_p - h_feats),
                   (0, fout_p - out_feats))).astype(jnp.bfloat16)
    w2s = _pad2(params["w2_self"], hid_p, fout_p).astype(jnp.bfloat16)
    b2 = _pad2(params["b2"], 1, fout_p).astype(jnp.float32)

    # conv1 + fused ReLU
    hw1 = _transform(feat_b, w1r, tm=tm)
    h1 = _aggregate(adj_b, hw1, feat_b, w1s, b1, tm=tm, tk=tk, apply_relu=True)

    # conv2
    h1_b = h1.astype(jnp.bfloat16)
    hw2 = _transform(h1_b, w2r, tm=tm)
    h2 = _aggregate(adj_b, hw2, h1_b, w2s, b2, tm=tm, tk=tk, apply_relu=False)

    return h2[:n_nodes, :out_feats]


# --------------------------------------------------------------------------
# Pure-JAX reference (mirrors the kernel's bf16-operand / f32-accumulate math).
# --------------------------------------------------------------------------
def _reference_forward(params, adj, feat):
    bf, f32 = jnp.bfloat16, jnp.float32
    a = adj.astype(bf)

    def conv(h, w_rel, w_self, b):
        h_b = h.astype(bf)
        out = jnp.dot(h_b, w_self.astype(bf), preferred_element_type=f32) + b
        for r in range(a.shape[0]):
            hw = jnp.dot(h_b, w_rel[r].astype(bf),
                         preferred_element_type=f32).astype(bf)
            out = out + jnp.dot(a[r], hw, preferred_element_type=f32)
        return out

    h = jax.nn.relu(conv(feat, params["w1_rel"], params["w1_self"],
                         params["b1"]))
    return conv(h, params["w2_rel"], params["w2_self"], params["b2"])


def init_params(key, in_feats, h_feats, out_feats, num_rels=2):
    ks = jax.random.split(key, 9)
    scale = 0.2
    params = {
        # TODO(synk): shift_embedding = nn.Linear(5, in_feats) is defined in
        # __init__ but never used in forward(); initialized for parity only.
        "shift_w": scale * jax.random.normal(ks[0], (5, in_feats), jnp.float32),
        "shift_b": scale * jax.random.normal(ks[1], (in_feats,), jnp.float32),
        # conv1: RelGraphConv(in_feats, h_feats, num_rels=2)
        "w1_rel": scale * jax.random.normal(ks[2], (num_rels, in_feats, h_feats),
                                            jnp.float32),
        "w1_self": scale * jax.random.normal(ks[3], (in_feats, h_feats),
                                             jnp.float32),
        "b1": scale * jax.random.normal(ks[4], (1, h_feats), jnp.float32),
        # conv2: RelGraphConv(h_feats, out_feats, num_rels=2)
        "w2_rel": scale * jax.random.normal(ks[5], (num_rels, h_feats, out_feats),
                                            jnp.float32),
        "w2_self": scale * jax.random.normal(ks[6], (h_feats, out_feats),
                                             jnp.float32),
        "b2": scale * jax.random.normal(ks[7], (1, out_feats), jnp.float32),
    }
    return params


if __name__ == "__main__":
    key = jax.random.PRNGKey(0)
    k_feat, k_src, k_dst, k_ety, k_par = jax.random.split(key, 5)

    # Small synthetic graph: N nodes, E edges, R=2 relation types.
    N, E, R = 16, 48, 2
    in_feats, h_feats, out_feats = 8, 32, 16

    feat = jax.random.normal(k_feat, (N, in_feats), jnp.float32)
    src = jax.random.randint(k_src, (E,), 0, N)
    dst = jax.random.randint(k_dst, (E,), 0, N)
    etype = jax.random.randint(k_ety, (E,), 0, R)

    # Dense per-relation adjacency A[r, dst, src] = edge multiplicity.
    adj = jnp.zeros((R, N, N), jnp.float32).at[etype, dst, src].add(1.0)
    assert float(adj.max()) <= 256.0  # bf16 represents these counts exactly

    params = init_params(k_par, in_feats, h_feats, out_feats, num_rels=R)

    out = encoder_forward(params, adj, feat)
    out = jax.block_until_ready(out)

    ref = _reference_forward(params, adj, feat)
    assert out.shape == (N, out_feats)
    assert jnp.allclose(out, ref, atol=1e-2, rtol=1e-2), (
        "Pallas output mismatch vs. reference")

    print("KERNEL_OK")
</pallas_src>

<mosaic_0001>
module attributes {stable_mosaic.version = 11 : i64} {
  func.func @_transform_kernel(%arg0: i32, %arg1: i32, %arg2: memref<128x128xbf16, #tpu.memory_space<vmem>>, %arg3: memref<1x128x128xbf16, #tpu.memory_space<vmem>>, %arg4: memref<1x128x128xbf16, #tpu.memory_space<vmem>>) attributes {dimension_semantics = [#tpu.dimension_semantics<parallel>, #tpu.dimension_semantics<arbitrary>], iteration_bounds = array<i64: 1, 2>, scalar_prefetch = 0 : i64, scratch_operands = 0 : i64, tpu.core_type = #tpu.core_type<tc>, window_params = [{transform_indices = @transform_0, window_bounds = array<i64: 128, 128>}, {transform_indices = @transform_1, window_bounds = array<i64: 1, 128, 128>}, {transform_indices = @transform_2, window_bounds = array<i64: 1, 128, 128>}]} {
    %c0 = arith.constant 0 : index
    %c0_0 = arith.constant 0 : index
    %0 = vector.load %arg2[%c0, %c0_0] : memref<128x128xbf16, #tpu.memory_space<vmem>>, vector<128x128xbf16>
    %c0_1 = arith.constant 0 : index
    %c0_2 = arith.constant 0 : index
    %c0_3 = arith.constant 0 : index
    %1 = vector.load %arg3[%c0_1, %c0_2, %c0_3] : memref<1x128x128xbf16, #tpu.memory_space<vmem>>, vector<1x128x128xbf16>
    %2 = vector.shape_cast %1 : vector<1x128x128xbf16> to vector<128x128xbf16>
    %cst = arith.constant dense<0.000000e+00> : vector<128x128xf32>
    %3 = tpu.matmul %0, %2, %cst {dimension_numbers = #tpu.dot_dimension_numbers<[1], [0], [0], [1], [0, 0, 1, 1], [], []>} : vector<128x128xbf16>, vector<128x128xbf16>, vector<128x128xf32> -> vector<128x128xf32>
    %4 = arith.truncf %3 : vector<128x128xf32> to vector<128x128xbf16>
    %c0_4 = arith.constant 0 : index
    %c0_5 = arith.constant 0 : index
    %c0_6 = arith.constant 0 : index
    %5 = vector.load %arg4[%c0_4, %c0_5, %c0_6] : memref<1x128x128xbf16, #tpu.memory_space<vmem>>, vector<1x128x128xbf16>
    %6 = vector.shape_cast %5 : vector<1x128x128xbf16> to vector<128x128xbf16>
    %7 = vector.shape_cast %4 : vector<128x128xbf16> to vector<1x128x128xbf16>
    tpu.vector_store %arg4[%c0_4, %c0_5, %c0_6], %7 {strides = array<i32>} : memref<1x128x128xbf16, #tpu.memory_space<vmem>>, vector<1x128x128xbf16>,
    return
  }
  func.func @transform_0(%arg0: i32, %arg1: i32) -> (i32, i32) {
    %c0_i32 = arith.constant 0 : i32
    %c0_i32_0 = arith.constant 0 : i32
    return %arg0, %c0_i32 : i32, i32
  }
  func.func @transform_1(%arg0: i32, %arg1: i32) -> (i32, i32, i32) {
    %c0_i32 = arith.constant 0 : i32
    %c0_i32_0 = arith.constant 0 : i32
    %c0_i32_1 = arith.constant 0 : i32
    return %arg1, %c0_i32, %c0_i32_0 : i32, i32, i32
  }
  func.func @transform_2(%arg0: i32, %arg1: i32) -> (i32, i32, i32) {
    %c0_i32 = arith.constant 0 : i32
    %c0_i32_0 = arith.constant 0 : i32
    return %arg1, %arg0, %c0_i32 : i32, i32, i32
  }
}

</mosaic_0001>

<bundles_post_ra>
// kernel: tpu_custom_call.1
= control target key start
LH: loop header
LB: loop body
LE: loop exit
PB: predicated region body
PF: predicated region fallthrough
CT: control target
= control target key end

     0   :  { %7 = vsyncpa [#allocation3], 0  ;;  %s1299_s0 = inlined_call_operand.hbm [shape: bf16[128,128], index: 0, kind: input, shape index: {}]   ;;  %s1300_s1 = inlined_call_operand.hbm [shape: bf16[2,128,128], index: 1, kind: input, shape index: {}]   ;;  %s1301_s2 = inlined_call_operand.hbm [shape: bf16[2,128,128], index: 2, kind: output, shape index: {}]  }
   0x1   :  { %8 = vsyncpa [#allocation6], 0 }
   0x2   :  { %10 = vsyncpa [#allocation6 + $0x1], 0 }
   0x3   :  { %11 = vsyncpa [#allocation4], 0 }
   0x4   :  { %13 = vsyncpa [#allocation4 + $0x1], 0  ;;  %s1060_s9 = smov 0   ;;  %s1062_s10 = smov 0  }
   0x5   :  { %s1064_s11 = smov 0   ;;  %s1066_s12 = smov 0  }
   0x6   :  { %s1068_s13 = smov 0   ;;  %s1070_s14 = smov 0  }
   0x7 LB: > { %s621_s15 = sadd.s32 4294967295, %s1036_s14   ;;  %s622_s16 = sadd.s32 4294967294, %s1036_s14   ;;  %s1036_s14 = sphi %s1070_s14, %s19_s14   ;;  %s1032_s13 = sphi %s1068_s13, %s1325_s13   ;;  %s1028_s12 = sphi %s1066_s12, %s1324_s12   ;;  %s1024_s11 = sphi %s1064_s11, %s1323_s11   ;;  %s1020_s10 = sphi %s1062_s10, %s1322_s10   ;;  %s1016_s9 = sphi %s1060_s9, %s1321_s9  }
   0x8   : > { %p77_p0 = scmp.ne.s32.totalorder %s1020_s10, %s1016_s9  ;;  %p1094_p1 = scmp.eq.s32.totalorder %s621_s15, 0 }
   0x9   : > { %p1098_p2 = scmp.eq.s32.totalorder %s621_s15, 1  ;;  %p109_p3 = scmp.eq.s32.totalorder %s622_s16, 1 }
   0xa   : > { %s1306_s17 = scalar_select %p1094_p1, 1, 0 }
   0xb   : > { %s1307_s18 = scalar_select %p1098_p2, 1, 0 }
   0xc   : > { %p1104_p4 = por %p1094_p1, %p77_p0  ;;  %p623_p5 = scmp.ge.s32.totalorder %s1036_s14, 1 }
   0xd   : > { %p1109_p6 = por %p109_p3, %p77_p0  ;;  %p116_p7 = scmp.lt.s32.totalorder %s1036_s14, 3 }
   0xe   : > { %s1308_s19 = scalar_select %p1104_p4, 1, 0 }
   0xf   : > { %s1309_s20 = scalar_select %p1109_p6, 1, 0 }
  0x10   : > { %p1114_p8 = pnand %p623_p5, %p116_p7  ;;  %s1038_s22 = smov [#allocation2]  }
  0x11   : > { %s131_s23 = sshll.u32 %s1038_s22, 4  ;;  %s28_s25 = sadd.s32 1, %s1032_s13  ;;  %s132_s23 = int_to_ptr.vmem [resolvable:$true] %s131_s23 }
  0x12   : > { %s1310_s21 = scalar_select %p1114_p8, 1, 0 }
  0x13   : > { %p807_p9 = pneg %p1114_p8  ;;  %s892_s28 = scalar_lea.hbm %s1299_s0, 1024 }
  0x14   : > { %p893_p12 = scmp.ne.s32.totalorder %s1299_s0, %s892_s28  ;;  %p899_p5 = scmp.lt.u32.totalorder %s892_s28, %s1299_s0 }
  0x15   : > { %p1123_p11 = pnand %p807_p9, %p1094_p1 }
  0x17   : > { %p894_p13 = pneg %p1123_p11 }
  0x19   : > { %p895_p0 = pnand %p894_p13, %p893_p12 }
  0x1b   : > { %p896_p3 = pneg %p895_p0 }
  0x1d   : > { %p901_p7 = pnand %p899_p5, %p896_p3 }
  0x1f   : > { %904 = shalt.err (!%p901_p7)
}
  0x20   : > { %s905_s5 = scalar_lea.vmem %s132_s23, 1024  ;;  %p913_p4 = scmp.lt.s32.totalorder %s132_s23, %s132_s23 }
  0x21   : > { %p906_p9 = scmp.ne.s32.totalorder %s132_s23, %s905_s5  ;;  %p914_p1 = scmp.lt.s32.totalorder %s905_s5, %s905_s5 }
  0x23   : > { %p908_p10 = pnand %p906_p9, %p894_p13  ;;  %p915_p8 = por %p914_p1, %p913_p4 }
  0x25   : > { %p909_p6 = pneg %p908_p10 }
  0x27   : > { %p916_p2 = pnand %p915_p8, %p909_p6 }
  0x29   : > { %919 = shalt.err (!%p916_p2)
}
  0x2a   : > { %s1039_s6 = smov 64   ;;  %s1040_s7 = smov 4  }
  0x2b   : > { %810 = dma.hbm_to_vmem [thread:$0]  (!%p1123_p11), %s1299_s0, 1024, %s132_s23, [#allocation3], %s1039_s6, %s1039_s6, %s1040_s7  }
  0x2c   : > { %p29_p1 = scmp.ge.s32.totalorder %s28_s25, 2  ;;  %s64_s16 = sadd.s32 1, %s1024_s11 }
  0x2d   : > { %p71_p2 = scmp.ne.s32.totalorder %s1024_s11, %s1020_s10  ;;  %p72_p4 = scmp.eq.s32.totalorder %s1036_s14, 0 }
  0x2e   : > { %s1327_s25 = smov (%p29_p1, %s28_s25), 0  ;;  %p1313_p8 = scmp.ne.s32.totalorder %s1307_s18, 0 }
  0x2f   : > { %p1153_p6 = por %p72_p4, %p71_p2  ;;  %s61_s26 = ssub.s32 %s1032_s13, %s1327_s25 }
  0x30   : > { %p1159_p10 = por %p1313_p8, %p71_p2  ;;  %p820_p12 = scmp.lt.s32.totalorder %s1036_s14, 2 }
  0x31   : > { %p62_p11 = scmp.eq.s32.totalorder %s61_s26, 0  ;;  %s145_s23 = sand.u32 1, %s1024_s11  }
  0x32   : > { %s626_s27 = sshll.u32 %s145_s23, 6  ;;  %s670_s29 = sshll.u32 %s1032_s13, 10 }
  0x33   : > { %s1168_s28 = scalar_select %p62_p11, %s1024_s11, %s64_s16  }
  0x34   : > { %s1174_s4 = scalar_lea.hbm %s1300_s1, %s670_s29  ;;  %s149_s18 = scalar_lea.vmem [#allocation5], %s626_s27 }
  0x35   : > { %s156_s5 = sshll.u32 %s149_s18, 4  ;;  %p1180_p13 = pnand %p820_p12, %p1153_p6  ;;  %s1176_s5 = int_to_ptr.vmem [resolvable:$true] %s156_s5 }
  0x36   : > { %s1184_s15 = scalar_lea.sflag [#allocation6], %s145_s23  ;;  %s920_s16 = scalar_lea.hbm %s1174_s4, 1024 }
  0x37   : > { %p921_p0 = scmp.ne.s32.totalorder %s1174_s4, %s920_s16  ;;  %p922_p3 = pneg %p1180_p13 }
  0x38   : > { %s925_s22 = scalar_lea.hbm %s1300_s1, 2048  ;;  %p926_p9 = scmp.lt.u32.totalorder %s1174_s4, %s1300_s1 }
  0x39   : > { %p923_p5 = pnand %p922_p3, %p921_p0  ;;  %p927_p1 = scmp.lt.u32.totalorder %s925_s22, %s920_s16 }
  0x3a   : > { %p929_p4 = scmp.lt.u32.totalorder %s920_s16, %s1174_s4 }
  0x3b   : > { %p924_p7 = pneg %p923_p5  ;;  %p928_p2 = por %p927_p1, %p926_p9 }
  0x3d   : > { %p930_p6 = por %p929_p4, %p928_p2 }
  0x3f   : > { %p931_p8 = pnand %p930_p6, %p924_p7 }
  0x41   : > { %934 = shalt.err (!%p931_p8)
}
  0x42   : > { %s935_s23 = scalar_lea.vmem %s1176_s5, 1024  ;;  %s1041_s3 = smov [#allocation5]  }
  0x43   : > { %p936_p12 = scmp.ne.s32.totalorder %s1176_s5, %s935_s23  ;;  %s940_s18 = sshll.u32 %s1041_s3, 4  ;;  %s941_s18 = int_to_ptr.vmem [resolvable:$false] %s940_s18 }
  0x44   : > { %s942_s26 = scalar_lea.vmem %s941_s18, 2048  ;;  %p943_p5 = scmp.lt.s32.totalorder %s1176_s5, %s941_s18 }
  0x45   : > { %p938_p11 = pnand %p936_p12, %p922_p3  ;;  %p944_p9 = scmp.lt.s32.totalorder %s942_s26, %s935_s23 }
  0x47   : > { %p939_p0 = pneg %p938_p11  ;;  %p945_p1 = por %p944_p9, %p943_p5 }
  0x49   : > { %p946_p2 = pnand %p945_p1, %p939_p0 }
  0x4b   : > { %949 = shalt.err (!%p946_p2)
}
  0x4c   : > { %814 = dma.hbm_to_vmem [thread:$0]  (!%p1180_p13), %s1174_s4, 1024, %s1176_s5, %s1184_s15, %s1039_s6, %s1039_s6, %s1040_s7  }
  0x4d   : > { %p1316_p3 = scmp.ne.s32.totalorder %s1310_s21, 0 }
  0x4e   : > { %p1317_p7 = scmp.ne.s32.totalorder (!%p1316_p3), %s1306_s17, 0 }
  0x4f   : > { %168 = sbr.rel (%p1316_p3) target bundleno = 364 (0x16c), region = 28 }
  0x56   : > { %1003 = dma.done.wait (%p1317_p7), [#allocation3], 1024  }
  0x57   : > { %1005 = vsyncadd (%p1317_p7), [#allocation3], 4294966272  ;;  %s1222_s16 = sand.u32 1, %s1020_s10   ;;  %p1318_p13 = scmp.ne.s32.totalorder %s1308_s19, 0 }
  0x58   : > { %s631_s8 = sshll.u32 %s1222_s16, 6  ;;  %s175_s27 = scalar_lea.sflag [#allocation6], %s1222_s16 }
  0x59   : > { %s1228_s6 = scalar_lea.vmem [#allocation5], %s631_s8 }
  0x5a   : > { %1007 = dma.done.wait (%p1318_p13), %s175_s27, 1024  }
  0x5b   : > { %1009 = vsyncadd (%p1318_p13), %s175_s27, 4294966272  ;;  %v876_v0 = vld [vmem:[%s1228_s6] sm:$0xff]   ;;  %v877_v1 = vld [vmem:[%s1228_s6 + $0x8] sm:$0xff]   ;;  %s198_s17 = scalar_lea.vmem [#allocation7], %s631_s8  ;;  %s687_s21 = sshll.u32 %s1028_s12, 10 }
  0x5c   : > { %751 = vmatprep.subr.bf16.mxu0 %v876_v0  ;;  %783 = vmatprep.subr.bf16.mxu1 %v876_v0  ;;  %v878_v2 = vld [vmem:[%s1228_s6 + $0x10] sm:$0xff]   ;;  %v879_v3 = vld [vmem:[%s1228_s6 + $0x18] sm:$0xff]   ;;  %v884_v4 = vld [vmem:[#allocation2] sm:$0xff]   ;;  %s523_s19 = sshll.u32 %s198_s17, 4  ;;  %s1250_s5 = scalar_lea.hbm %s1301_s2, %s687_s21  ;;  %s1245_s19 = int_to_ptr.vmem [resolvable:$true] %s523_s19 }
  0x5d   : > { %752 = vmatpush3.bf16.msra.mxu0 %v876_v0  ;;  %791 = vmatpush3.bf16.msra.mxu1 %v876_v0  ;;  %v885_v5 = vld [vmem:[#allocation2 + $0x20] sm:$0xff]   ;;  %v881_v7 = vld [vmem:[%s1228_s6 + $0x28] sm:$0xff]   ;;  %v882_v8 = vld [vmem:[%s1228_s6 + $0x30] sm:$0xff]   ;;  %s508_s12 = scalar_lea.sflag [#allocation4], %s1222_s16  ;;  %s950_s15 = scalar_lea.vmem %s1245_s19, 1024 }
  0x5e   : > { %753 = vmatprep.subr.bf16.mxu0 %v877_v1  ;;  %784 = vmatprep.subr.bf16.mxu1 %v877_v1  ;;  %v880_v6 = vld [vmem:[%s1228_s6 + $0x20] sm:$0xff]   ;;  %v883_v9 = vld [vmem:[%s1228_s6 + $0x38] sm:$0xff]   ;;  %v886_v10 = vld [vmem:[#allocation2 + $0x8] sm:$0xff]   ;;  %p951_p4 = scmp.ne.s32.totalorder %s1245_s19, %s950_s15  ;;  %s1042_s22 = smov [#allocation7]  }
  0x5f   : > { %767 = vmatprep.mubr.bf16.mxu0 %v884_v4  ;;  %775 = vmatprep.mubr.bf16.mxu1 %v885_v5  ;;  %v887_v11 = vld [vmem:[#allocation2 + $0x28] sm:$0xff]   ;;  %v888_v12 = vld [vmem:[#allocation2 + $0x10] sm:$0xff]   ;;  %v890_v14 = vld [vmem:[#allocation2 + $0x18] sm:$0xff]   ;;  %s954_s29 = sshll.u32 %s1042_s22, 4  ;;  %s955_s29 = int_to_ptr.vmem [resolvable:$false] %s954_s29 }
  0x60   : > { %v889_v13 = vld [vmem:[#allocation2 + $0x30] sm:$0xff]   ;;  %v891_v15 = vld [vmem:[#allocation2 + $0x38] sm:$0xff]   ;;  %p952_p6 = pnand %p951_p4, %p1159_p10  ;;  %s956_s30 = scalar_lea.vmem %s955_s29, 2048 }
  0x61   : > { %754 = vmatpush3.bf16.msra.mxu0 %v877_v1  ;;  %792 = vmatpush3.bf16.msra.mxu1 %v877_v1  ;;  %p957_p12 = scmp.lt.s32.totalorder %s1245_s19, %s955_s29  ;;  %p958_p11 = scmp.lt.s32.totalorder %s956_s30, %s950_s15 }
  0x62   : > { %755 = vmatprep.subr.bf16.mxu0 %v878_v2  ;;  %785 = vmatprep.subr.bf16.mxu1 %v878_v2  ;;  %p953_p8 = pneg %p952_p6 }
  0x63   : > { %p959_p0 = por %p958_p11, %p957_p12 }
  0x65   : > { %756 = vmatpush3.bf16.msra.mxu0 %v878_v2  ;;  %793 = vmatpush3.bf16.msra.mxu1 %v878_v2  ;;  %p960_p5 = pnand %p959_p0, %p953_p8 }
  0x66   : > { %757 = vmatprep.subr.bf16.mxu0 %v879_v3  ;;  %786 = vmatprep.subr.bf16.mxu1 %v879_v3 }
  0x69   : > { %758 = vmatpush3.bf16.msra.mxu0 %v879_v3  ;;  %794 = vmatpush3.bf16.msra.mxu1 %v879_v3 }
  0x6a   : > { %759 = vmatprep.subr.bf16.mxu0 %v880_v6  ;;  %787 = vmatprep.subr.bf16.mxu1 %v880_v6 }
  0x6d   : > { %760 = vmatpush3.bf16.msra.mxu0 %v880_v6  ;;  %795 = vmatpush3.bf16.msra.mxu1 %v880_v6 }
  0x6e   : > { %761 = vmatprep.subr.bf16.mxu0 %v881_v7  ;;  %788 = vmatprep.subr.bf16.mxu1 %v881_v7 }
  0x71   : > { %762 = vmatpush3.bf16.msra.mxu0 %v881_v7  ;;  %796 = vmatpush3.bf16.msra.mxu1 %v881_v7 }
  0x72   : > { %763 = vmatprep.subr.bf16.mxu0 %v882_v8  ;;  %789 = vmatprep.subr.bf16.mxu1 %v882_v8 }
  0x75   : > { %764 = vmatpush3.bf16.msra.mxu0 %v882_v8  ;;  %797 = vmatpush3.bf16.msra.mxu1 %v882_v8 }
  0x76   : > { %765 = vmatprep.subr.bf16.mxu0 %v883_v9  ;;  %790 = vmatprep.subr.bf16.mxu1 %v883_v9 }
  0x79   : > { %766 = vmatpush3.bf16.msra.mxu0 %v883_v9  ;;  %798 = vmatpush3.bf16.msra.mxu1 %v883_v9 }
  0x7c   : > { %768 = vmatmul.mubr.bf16.vlgmr.msra.gmra.mrb[0].mxu0 %v886_v10  ;;  %776 = vmatmul.mubr.bf16.vlgmr.msra.gmra.mrb[0].mxu1 %v887_v11 }
  0x7d   : > { %771 = vmatprep.mubr.bf16.mxu0 %v888_v12  ;;  %779 = vmatprep.mubr.bf16.mxu1 %v889_v13 }
  0x84   : > { %772 = vmatmul.mubr.bf16.gmra.mrb[4].mxu0 %v890_v14  ;;  %780 = vmatmul.mubr.bf16.gmra.mrb[4].mxu1 %v891_v15 }
 0x14f   : > { %v769_v16 = vpop.f32.mrb[0].mxu0  ;;  %v777_v17 = vpop.f32.mrb[0].mxu1 }
 0x150   : > { %v364_v18 = vpop.f32.mrb[1].mxu0  ;;  %v396_v19 = vpop.f32.mrb[1].mxu1 }
 0x151   : > { %v770_v20 = vpop.f32.mrb[2].mxu0  ;;  %v778_v21 = vpop.f32.mrb[2].mxu1 }
 0x152   : > { %v696_v22 = vpack.c.bf16 %v770_v20, %v769_v16  ;;  %v716_v23 = vpack.c.bf16 %v778_v21, %v777_v17  ;;  %v367_v24 = vpop.f32.mrb[3].mxu0  ;;  %v399_v25 = vpop.f32.mrb[3].mxu1 }
 0x153   : > { %v691_v26 = vpack.c.bf16 %v367_v24, %v364_v18  ;;  %v711_v27 = vpack.c.bf16 %v399_v25, %v396_v19 }
 0x154   : > { %728 = vst [vmem:[%s198_s17 + $0x8] sm:$0xff] %v696_v22   ;;  %732 = vst [vmem:[%s198_s17 + $0x28] sm:$0xff] %v716_v23  }
 0x155   : > { %692 = vst [vmem:[%s198_s17] sm:$0xff] %v691_v26   ;;  %731 = vst [vmem:[%s198_s17 + $0x20] sm:$0xff] %v711_v27  }
 0x157   : > { %v773_v28 = vpop.f32.mrb[4].mxu0  ;;  %v781_v29 = vpop.f32.mrb[4].mxu1 }
 0x158   : > { %v380_v30 = vpop.f32.mrb[5].mxu0  ;;  %v412_v31 = vpop.f32.mrb[5].mxu1 }
 0x159   : > { %v774_v32 = vpop.f32.mrb[6].mxu0  ;;  %v782_v33 = vpop.f32.mrb[6].mxu1 }
 0x15a   : > { %v706_v34 = vpack.c.bf16 %v774_v32, %v773_v28  ;;  %v726_v35 = vpack.c.bf16 %v782_v33, %v781_v29  ;;  %v383_v36 = vpop.f32.mrb[7].mxu0  ;;  %v415_v37 = vpop.f32.mrb[7].mxu1 }
 0x15b   : > { %v701_v38 = vpack.c.bf16 %v383_v36, %v380_v30  ;;  %v721_v39 = vpack.c.bf16 %v415_v37, %v412_v31 }
 0x15c   : > { %730 = vst [vmem:[%s198_s17 + $0x18] sm:$0xff] %v706_v34   ;;  %734 = vst [vmem:[%s198_s17 + $0x38] sm:$0xff] %v726_v35  }
 0x15d   : > { %729 = vst [vmem:[%s198_s17 + $0x10] sm:$0xff] %v701_v38   ;;  %733 = vst [vmem:[%s198_s17 + $0x30] sm:$0xff] %v721_v39  }
 0x15e   : > { %963 = shalt.err (!%p960_p5)
}
 0x15f   : > { %s964_s23 = scalar_lea.hbm %s1250_s5, 1024  ;;  %s968_s26 = scalar_lea.hbm %s1301_s2, 2048 }
 0x160   : > { %p965_p9 = scmp.ne.s32.totalorder %s1250_s5, %s964_s23  ;;  %p969_p3 = scmp.lt.u32.totalorder %s1250_s5, %s1301_s2 }
 0x161   : > { %p970_p7 = scmp.lt.u32.totalorder %s968_s26, %s964_s23  ;;  %p972_p4 = scmp.lt.u32.totalorder %s964_s23, %s1250_s5 }
 0x162   : > { %p966_p1 = pnand %p965_p9, %p1159_p10 }
 0x163   : > { %p971_p13 = por %p970_p7, %p969_p3 }
 0x164   : > { %p967_p2 = pneg %p966_p1 }
 0x165   : > { %p973_p6 = por %p972_p4, %p971_p13 }
 0x167   : > { %p974_p8 = pnand %p973_p6, %p967_p2 }
 0x169   : > { %977 = shalt.err (!%p974_p8)
}
 0x16a   : > { %s1043_s6 = smov 64   ;;  %s1044_s17 = smov 4  }
 0x16b   : > { %805 = dma.vmem_to_hbm [thread:$0]  (%p1159_p10), %s1245_s19, 1024, %s1250_s5, %s508_s12, %s1043_s6, %s1043_s6, %s1044_s17  }
 0x16c PF: > { %s538_s21 = sand.u32 1, %s1016_s9   ;;  %p1319_p12 = scmp.ne.s32.totalorder %s1309_s20, 0 }
 0x16d   : > { %p1320_p11 = scmp.ge.s32.totalorder %s1036_s14, 2  ;;  %s539_s7 = scalar_lea.sflag [#allocation4], %s538_s21 }
 0x16f   : > { %p816_p0 = pnand %p1320_p11, %p1319_p12 }
 0x171   : > { %1011 = dma.done.wait (!%p816_p0), %s539_s7, 1024  }
 0x172   : > { %1013 = vsyncadd (!%p816_p0), %s539_s7, 4294966272  ;;  %s19_s14 = sadd.s32 1, %s1036_s14   ;;  %s1321_s9 = smov %s1020_s10 }
 0x173   : > { %p16_p5 = scmp.ge.s32.totalorder %s19_s14, 4   ;;  %s1322_s10 = smov %s1024_s11 }
 0x174   : > { %s1323_s11 = smov %s1168_s28  ;;  %s1324_s12 = smov %s1032_s13 }
 0x175   : > { %s1325_s13 = smov %s1327_s25  ;;  %18 = sbr.rel (!%p16_p5) target bundleno = 7 (0x7), region = 79 }
 0x17c   :  { %544 = vsyncpa [#allocation3], 1 }
 0x17d   :  { %546 = vsyncpa [#allocation3 + $0x1], 1 }
 0x17e   :  { %547 = vsyncpa [#allocation6], 1 }
 0x17f   :  { %549 = vsyncpa [#allocation6 + $0x1], 1 }
 0x180   :  { %550 = vsyncpa [#allocation4], 1 }
 0x181   :  { %552 = vsyncpa [#allocation4 + $0x1], 1 }

</bundles_post_ra>
